<compile_context>
chip_gen: v7x
topology: tpu7x:2x2x1
jax: 0.10.0
libtpu: 0.0.40
codegen_flags: <defaults>
</compile_context>

<pallas_src>
import functools

import jax
import jax.numpy as jnp
from jax import lax
from jax.experimental import pallas as pl
from jax.experimental.pallas import tpu as pltpu

HIDDEN = 256
W4_PAD = 128   # final-layer weight padded 1 -> 128 cols (full-lane-width MXU N);
               # only column 0 is ever stored.
SUB = 128      # rows per in-kernel sub-chunk (bounds the vreg live set)


def _distnet_kernel(x_ref, w1_ref, b1_ref, w2_ref, b2_ref,
                    w3_ref, b3_ref, w4_ref, b4_ref, o_ref):
    def chain(x_f32):
        # f32 -> bf16 casts run on the VPU and hide under the MXU matmuls;
        # accumulation / bias / ReLU stay f32.
        h = jnp.dot(x_f32.astype(jnp.bfloat16), w1_ref[...],
                    preferred_element_type=jnp.float32) + b1_ref[...]
        h = jnp.maximum(h, 0.0)
        h = jnp.dot(h.astype(jnp.bfloat16), w2_ref[...],
                    preferred_element_type=jnp.float32) + b2_ref[...]
        h = jnp.maximum(h, 0.0)
        h = jnp.dot(h.astype(jnp.bfloat16), w3_ref[...],
                    preferred_element_type=jnp.float32) + b3_ref[...]
        h = jnp.maximum(h, 0.0)
        out = jnp.dot(h.astype(jnp.bfloat16), w4_ref[...],
                      preferred_element_type=jnp.float32)
        # Only column 0 of the padded 256->128 head is real; slice before the
        # store so the kernel writes 4 B/row instead of 512 B/row.
        return out[:, :1] + b4_ref[...]

    tb = x_ref.shape[0]          # static at trace time
    if tb > SUB and tb % SUB == 0:
        # March the batch tile through the full 4-layer chain in 128-row
        # sub-chunks so live activations stay within the 64-vreg file.
        def body(c, carry):
            r0 = pl.multiple_of(c * SUB, SUB)
            o_ref[pl.ds(r0, SUB), :] = chain(x_ref[pl.ds(r0, SUB), :])
            return carry
        lax.fori_loop(0, tb // SUB, body, 0)
    else:
        o_ref[...] = chain(x_ref[...])


def _round_up(n, m):
    return ((n + m - 1) // m) * m


def _choose_tile(B, block_b):
    """Batch tile: small B -> one exact tile; larger B -> >=2 tiles of
    128-row multiples so both v7x TensorCores get work."""
    if B <= 256:
        return B                              # equals full dim -> always legal
    half = _round_up((B + 1) // 2, 128)       # ceil(B/2), rounded to 128 rows
    return max(128, min(block_b, half))


def prepare_params(params):
    """One-time weight prep (hoisted out of the forward path): bf16 cast of all
    weights and pad of the 256->1 head to 256->W4_PAD columns."""
    w4 = params["w4"]
    return {
        "w1": params["w1"].astype(jnp.bfloat16),
        "w2": params["w2"].astype(jnp.bfloat16),
        "w3": params["w3"].astype(jnp.bfloat16),
        "w4": jnp.pad(w4, ((0, 0), (0, W4_PAD - w4.shape[1]))).astype(jnp.bfloat16),
        "b1": params["b1"], "b2": params["b2"],
        "b3": params["b3"], "b4": params["b4"],
    }


def _const_spec(shape):
    nd = len(shape)
    return pl.BlockSpec(shape, lambda i, _nd=nd: (0,) * _nd)


@functools.partial(jax.jit, static_argnames=("block_b",))
def distnet_forward(x, prepped, *, block_b=1024):
    """x: (B, D_in) float32.  prepped: output of prepare_params()."""
    B, D_in = x.shape
    tb = _choose_tile(B, block_b)
    grid = (pl.cdiv(B, tb),)   # ragged last tile OK: rows are independent and
                               # out-of-bounds output rows are never written

    w1, w2, w3, w4 = prepped["w1"], prepped["w2"], prepped["w3"], prepped["w4"]
    b1, b2, b3, b4 = prepped["b1"], prepped["b2"], prepped["b3"], prepped["b4"]

    flops = 2 * B * (D_in * HIDDEN + 2 * HIDDEN * HIDDEN + HIDDEN)
    bytes_accessed = (B * D_in * 4 + B * 4
                      + 2 * (D_in * HIDDEN + 2 * HIDDEN * HIDDEN + HIDDEN * W4_PAD)
                      + 4 * (3 * HIDDEN + 1))
    cost = pl.CostEstimate(flops=flops, transcendentals=0,
                           bytes_accessed=bytes_accessed)

    return pl.pallas_call(
        _distnet_kernel,
        out_shape=jax.ShapeDtypeStruct((B, 1), jnp.float32),
        grid_spec=pltpu.PrefetchScalarGridSpec(
            num_scalar_prefetch=0,
            grid=grid,
            in_specs=[
                pl.BlockSpec((tb, D_in), lambda i: (i, 0)),   # f32 x tile
                _const_spec(w1.shape), _const_spec(b1.shape),
                _const_spec(w2.shape), _const_spec(b2.shape),
                _const_spec(w3.shape), _const_spec(b3.shape),
                _const_spec(w4.shape), _const_spec(b4.shape),
            ],
            out_specs=pl.BlockSpec((tb, 1), lambda i: (i, 0)),
        ),
        compiler_params=pltpu.CompilerParams(
            dimension_semantics=("parallel",)),
        cost_estimate=cost,
    )(x, w1, b1, w2, b2, w3, b3, w4, b4)


def init_distnet_params(key, input_shape):
    """Deterministic init mimicking nn.Linear default (U[-1/sqrt(fan_in), +])."""
    dims = [(input_shape, HIDDEN), (HIDDEN, HIDDEN), (HIDDEN, HIDDEN), (HIDDEN, 1)]
    params = {}
    for idx, (fan_in, fan_out) in enumerate(dims, start=1):
        key, kw, kb = jax.random.split(key, 3)
        bound = 1.0 / jnp.sqrt(jnp.float32(fan_in))
        # Stored as (in, out): transpose of PyTorch's (out, in) weight layout.
        params[f"w{idx}"] = jax.random.uniform(
            kw, (fan_in, fan_out), jnp.float32, -bound, bound)
        # Bias kept 2D (1, out) so it lives cleanly in VMEM and broadcasts.
        params[f"b{idx}"] = jax.random.uniform(
            kb, (1, fan_out), jnp.float32, -bound, bound)
    return params


def _reference_bf16(x, params):
    """Same math as the kernel: bf16 matmuls, f32 accumulate/bias/ReLU."""
    def mm(a, w):
        return jnp.dot(a.astype(jnp.bfloat16), w.astype(jnp.bfloat16),
                       preferred_element_type=jnp.float32)
    h = jnp.maximum(mm(x, params["w1"]) + params["b1"], 0.0)
    h = jnp.maximum(mm(h, params["w2"]) + params["b2"], 0.0)
    h = jnp.maximum(mm(h, params["w3"]) + params["b3"], 0.0)
    return mm(h, params["w4"]) + params["b4"]


def _reference_f32(x, params):
    h = jnp.maximum(x @ params["w1"] + params["b1"], 0.0)
    h = jnp.maximum(h @ params["w2"] + params["b2"], 0.0)
    h = jnp.maximum(h @ params["w3"] + params["b3"], 0.0)
    return h @ params["w4"] + params["b4"]


if __name__ == "__main__":
    key = jax.random.PRNGKey(0)
    k_param, k_x1, k_x2 = jax.random.split(key, 3)

    input_shape = 32
    params = init_distnet_params(k_param, input_shape)
    prepped = prepare_params(params)   # one-time bf16 cast + head pad

    # Small batch: single exact tile (tb = 8), un-chunked path.
    x_small = jax.random.normal(k_x1, (8, input_shape), jnp.float32)
    out_small = jax.block_until_ready(distnet_forward(x_small, prepped))
    assert out_small.shape == (8, 1), out_small.shape
    assert jnp.allclose(out_small, _reference_bf16(x_small, params),
                        atol=2e-3, rtol=2e-3)
    assert jnp.allclose(out_small, _reference_f32(x_small, params),
                        atol=1e-1, rtol=1e-1)

    # Moderate batch: 600 rows -> tb = 384, grid = 2 (exercises the parallel
    # multi-tile path, in-kernel 128-row sub-chunking, and the ragged last tile).
    x_big = jax.random.normal(k_x2, (600, input_shape), jnp.float32)
    out_big = jax.block_until_ready(distnet_forward(x_big, prepped))
    assert out_big.shape == (600, 1), out_big.shape
    assert jnp.allclose(out_big, _reference_bf16(x_big, params),
                        atol=2e-3, rtol=2e-3)
    assert jnp.allclose(out_big, _reference_f32(x_big, params),
                        atol=1e-1, rtol=1e-1)

    print("KERNEL_OK")
</pallas_src>

<mosaic_0001>
module attributes {stable_mosaic.version = 11 : i64} {
  func.func @_distnet_kernel(%arg0: i32, %arg1: memref<8x32xf32, #tpu.memory_space<vmem>>, %arg2: memref<32x256xbf16, #tpu.memory_space<vmem>>, %arg3: memref<1x256xf32, #tpu.memory_space<vmem>>, %arg4: memref<256x256xbf16, #tpu.memory_space<vmem>>, %arg5: memref<1x256xf32, #tpu.memory_space<vmem>>, %arg6: memref<256x256xbf16, #tpu.memory_space<vmem>>, %arg7: memref<1x256xf32, #tpu.memory_space<vmem>>, %arg8: memref<256x128xbf16, #tpu.memory_space<vmem>>, %arg9: memref<1x1xf32, #tpu.memory_space<vmem>>, %arg10: memref<8x1xf32, #tpu.memory_space<vmem>>) attributes {dimension_semantics = [#tpu.dimension_semantics<parallel>], iteration_bounds = array<i64: 1>, scalar_prefetch = 0 : i64, scratch_operands = 0 : i64, tpu.core_type = #tpu.core_type<tc>, window_params = [{transform_indices = @transform_0, window_bounds = array<i64: 8, 32>}, {pipeline_mode = #tpu.pipeline_mode<synchronous>, transform_indices = @transform_1, window_bounds = array<i64: 32, 256>}, {pipeline_mode = #tpu.pipeline_mode<synchronous>, transform_indices = @transform_2, window_bounds = array<i64: 1, 256>}, {pipeline_mode = #tpu.pipeline_mode<synchronous>, transform_indices = @transform_3, window_bounds = array<i64: 256, 256>}, {pipeline_mode = #tpu.pipeline_mode<synchronous>, transform_indices = @transform_4, window_bounds = array<i64: 1, 256>}, {pipeline_mode = #tpu.pipeline_mode<synchronous>, transform_indices = @transform_5, window_bounds = array<i64: 256, 256>}, {pipeline_mode = #tpu.pipeline_mode<synchronous>, transform_indices = @transform_6, window_bounds = array<i64: 1, 256>}, {pipeline_mode = #tpu.pipeline_mode<synchronous>, transform_indices = @transform_7, window_bounds = array<i64: 256, 128>}, {pipeline_mode = #tpu.pipeline_mode<synchronous>, transform_indices = @transform_8, window_bounds = array<i64: 1, 1>}, {transform_indices = @transform_9, window_bounds = array<i64: 8, 1>}]} {
    %c0 = arith.constant 0 : index
    %c0_0 = arith.constant 0 : index
    %0 = vector.load %arg1[%c0, %c0_0] : memref<8x32xf32, #tpu.memory_space<vmem>>, vector<8x32xf32>
    %1 = arith.truncf %0 : vector<8x32xf32> to vector<8x32xbf16>
    %c0_1 = arith.constant 0 : index
    %c0_2 = arith.constant 0 : index
    %2 = vector.load %arg2[%c0_1, %c0_2] : memref<32x256xbf16, #tpu.memory_space<vmem>>, vector<32x256xbf16>
    %cst = arith.constant dense<0.000000e+00> : vector<8x256xf32>
    %3 = tpu.matmul %1, %2, %cst {dimension_numbers = #tpu.dot_dimension_numbers<[1], [0], [0], [1], [0, 0, 1, 1], [], []>} : vector<8x32xbf16>, vector<32x256xbf16>, vector<8x256xf32> -> vector<8x256xf32>
    %c0_3 = arith.constant 0 : index
    %c0_4 = arith.constant 0 : index
    %4 = vector.load %arg3[%c0_3, %c0_4] : memref<1x256xf32, #tpu.memory_space<vmem>>, vector<1x256xf32>
    %5 = vector.broadcast %4 : vector<1x256xf32> to vector<8x256xf32>
    %6 = arith.addf %3, %5 : vector<8x256xf32>
    %cst_5 = arith.constant 0.000000e+00 : f32
    %7 = vector.broadcast %cst_5 : f32 to vector<8x256xf32>
    %8 = arith.maximumf %6, %7 : vector<8x256xf32>
    %9 = arith.truncf %8 : vector<8x256xf32> to vector<8x256xbf16>
    %c0_6 = arith.constant 0 : index
    %c0_7 = arith.constant 0 : index
    %10 = vector.load %arg4[%c0_6, %c0_7] : memref<256x256xbf16, #tpu.memory_space<vmem>>, vector<256x256xbf16>
    %cst_8 = arith.constant dense<0.000000e+00> : vector<8x256xf32>
    %11 = tpu.matmul %9, %10, %cst_8 {dimension_numbers = #tpu.dot_dimension_numbers<[1], [0], [0], [1], [0, 0, 1, 1], [], []>} : vector<8x256xbf16>, vector<256x256xbf16>, vector<8x256xf32> -> vector<8x256xf32>
    %c0_9 = arith.constant 0 : index
    %c0_10 = arith.constant 0 : index
    %12 = vector.load %arg5[%c0_9, %c0_10] : memref<1x256xf32, #tpu.memory_space<vmem>>, vector<1x256xf32>
    %13 = vector.broadcast %12 : vector<1x256xf32> to vector<8x256xf32>
    %14 = arith.addf %11, %13 : vector<8x256xf32>
    %cst_11 = arith.constant 0.000000e+00 : f32
    %15 = vector.broadcast %cst_11 : f32 to vector<8x256xf32>
    %16 = arith.maximumf %14, %15 : vector<8x256xf32>
    %17 = arith.truncf %16 : vector<8x256xf32> to vector<8x256xbf16>
    %c0_12 = arith.constant 0 : index
    %c0_13 = arith.constant 0 : index
    %18 = vector.load %arg6[%c0_12, %c0_13] : memref<256x256xbf16, #tpu.memory_space<vmem>>, vector<256x256xbf16>
    %cst_14 = arith.constant dense<0.000000e+00> : vector<8x256xf32>
    %19 = tpu.matmul %17, %18, %cst_14 {dimension_numbers = #tpu.dot_dimension_numbers<[1], [0], [0], [1], [0, 0, 1, 1], [], []>} : vector<8x256xbf16>, vector<256x256xbf16>, vector<8x256xf32> -> vector<8x256xf32>
    %c0_15 = arith.constant 0 : index
    %c0_16 = arith.constant 0 : index
    %20 = vector.load %arg7[%c0_15, %c0_16] : memref<1x256xf32, #tpu.memory_space<vmem>>, vector<1x256xf32>
    %21 = vector.broadcast %20 : vector<1x256xf32> to vector<8x256xf32>
    %22 = arith.addf %19, %21 : vector<8x256xf32>
    %cst_17 = arith.constant 0.000000e+00 : f32
    %23 = vector.broadcast %cst_17 : f32 to vector<8x256xf32>
    %24 = arith.maximumf %22, %23 : vector<8x256xf32>
    %25 = arith.truncf %24 : vector<8x256xf32> to vector<8x256xbf16>
    %c0_18 = arith.constant 0 : index
    %c0_19 = arith.constant 0 : index
    %26 = vector.load %arg8[%c0_18, %c0_19] : memref<256x128xbf16, #tpu.memory_space<vmem>>, vector<256x128xbf16>
    %cst_20 = arith.constant dense<0.000000e+00> : vector<8x128xf32>
    %27 = tpu.matmul %25, %26, %cst_20 {dimension_numbers = #tpu.dot_dimension_numbers<[1], [0], [0], [1], [0, 0, 1, 1], [], []>} : vector<8x256xbf16>, vector<256x128xbf16>, vector<8x128xf32> -> vector<8x128xf32>
    %28 = vector.extract_strided_slice %27 {offsets = [0, 0], sizes = [8, 1], strides = [1, 1]} : vector<8x128xf32> to vector<8x1xf32>
    %c0_21 = arith.constant 0 : index
    %c0_22 = arith.constant 0 : index
    %29 = vector.load %arg9[%c0_21, %c0_22] : memref<1x1xf32, #tpu.memory_space<vmem>>, vector<1x1xf32>
    %30 = vector.broadcast %29 : vector<1x1xf32> to vector<8x1xf32>
    %31 = arith.addf %28, %30 : vector<8x1xf32>
    %c0_23 = arith.constant 0 : index
    %c0_24 = arith.constant 0 : index
    %32 = vector.load %arg10[%c0_23, %c0_24] : memref<8x1xf32, #tpu.memory_space<vmem>>, vector<8x1xf32>
    tpu.vector_store %arg10[%c0_23, %c0_24], %31 {strides = array<i32>} : memref<8x1xf32, #tpu.memory_space<vmem>>, vector<8x1xf32>,
    return
  }
  func.func @transform_0(%arg0: i32) -> (i32, i32) {
    %c0_i32 = arith.constant 0 : i32
    %c0_i32_0 = arith.constant 0 : i32
    return %arg0, %c0_i32 : i32, i32
  }
  func.func @transform_1(%arg0: i32) -> (i32, i32) {
    %c0_i32 = arith.constant 0 : i32
    %c0_i32_0 = arith.constant 0 : i32
    %c0_i32_1 = arith.constant 0 : i32
    return %c0_i32, %c0_i32_0 : i32, i32
  }
  func.func @transform_2(%arg0: i32) -> (i32, i32) {
    %c0_i32 = arith.constant 0 : i32
    %c0_i32_0 = arith.constant 0 : i32
    %c0_i32_1 = arith.constant 0 : i32
    return %c0_i32, %c0_i32_0 : i32, i32
  }
  func.func @transform_3(%arg0: i32) -> (i32, i32) {
    %c0_i32 = arith.constant 0 : i32
    %c0_i32_0 = arith.constant 0 : i32
    %c0_i32_1 = arith.constant 0 : i32
    return %c0_i32, %c0_i32_0 : i32, i32
  }
  func.func @transform_4(%arg0: i32) -> (i32, i32) {
    %c0_i32 = arith.constant 0 : i32
    %c0_i32_0 = arith.constant 0 : i32
    %c0_i32_1 = arith.constant 0 : i32
    return %c0_i32, %c0_i32_0 : i32, i32
  }
  func.func @transform_5(%arg0: i32) -> (i32, i32) {
    %c0_i32 = arith.constant 0 : i32
    %c0_i32_0 = arith.constant 0 : i32
    %c0_i32_1 = arith.constant 0 : i32
    return %c0_i32, %c0_i32_0 : i32, i32
  }
  func.func @transform_6(%arg0: i32) -> (i32, i32) {
    %c0_i32 = arith.constant 0 : i32
    %c0_i32_0 = arith.constant 0 : i32
    %c0_i32_1 = arith.constant 0 : i32
    return %c0_i32, %c0_i32_0 : i32, i32
  }
  func.func @transform_7(%arg0: i32) -> (i32, i32) {
    %c0_i32 = arith.constant 0 : i32
    %c0_i32_0 = arith.constant 0 : i32
    %c0_i32_1 = arith.constant 0 : i32
    return %c0_i32, %c0_i32_0 : i32, i32
  }
  func.func @transform_8(%arg0: i32) -> (i32, i32) {
    %c0_i32 = arith.constant 0 : i32
    %c0_i32_0 = arith.constant 0 : i32
    %c0_i32_1 = arith.constant 0 : i32
    return %c0_i32, %c0_i32_0 : i32, i32
  }
  func.func @transform_9(%arg0: i32) -> (i32, i32) {
    %c0_i32 = arith.constant 0 : i32
    %c0_i32_0 = arith.constant 0 : i32
    return %arg0, %c0_i32 : i32, i32
  }
}

</mosaic_0001>

<bundles_post_ra>
// kernel: distnet_forward.1
= control target key start
LH: loop header
LB: loop body
LE: loop exit
PB: predicated region body
PF: predicated region fallthrough
CT: control target
= control target key end

     0   :  { %s1377_s0 = inlined_call_operand.hbm [shape: f32[8,32], index: 0, kind: input, shape index: {}]   ;;  %s1378_s1 = inlined_call_operand.hbm [shape: bf16[32,256], index: 1, kind: input, shape index: {}]   ;;  %s1379_s2 = inlined_call_operand.vmem [shape: f32[1,256], index: 2, kind: input, shape index: {}]   ;;  %s1380_s3 = inlined_call_operand.hbm [shape: bf16[256,256], index: 3, kind: input, shape index: {}]   ;;  %s1381_s4 = inlined_call_operand.vmem [shape: f32[1,256], index: 4, kind: input, shape index: {}]   ;;  %s1382_s5 = inlined_call_operand.hbm [shape: bf16[256,256], index: 5, kind: input, shape index: {}]   ;;  %s1383_s6 = inlined_call_operand.vmem [shape: f32[1,256], index: 6, kind: input, shape index: {}]   ;;  %s1384_s7 = inlined_call_operand.hbm [shape: bf16[256,128], index: 7, kind: input, shape index: {}]   ;;  %s1385_s8 = inlined_call_operand.<no memory space> [shape: f32[1,1], index: 8, kind: input, shape index: {}]   ;;  %s1386_s9 = inlined_call_operand.vmem [shape: f32[8,1], index: 9, kind: output, shape index: {}]  }
   0x1   :  { %v14_v0 = vstv %s1385_s8 }
   0x2   :  { %15 = vst [vmem:[#allocation2] sm:$0x1] %v14_v0 }
   0x3   :  { %16 = vsyncpa [#allocation4], 0 }
   0x4   :  { %17 = vsyncpa [#allocation6], 0 }
   0x5   :  { %18 = vsyncpa [#allocation9], 0  ;;  %s1223_s11 = smov [#allocation5]   ;;  %s1107_s15 = scalar_lea.hbm %s1378_s1, 512 }
   0x6   :  { %s34_s12 = sshll.u32 %s1223_s11, 4  ;;  %p1108_p0 = scmp.ne.s32.totalorder %s1378_s1, %s1107_s15  ;;  %s35_s12 = int_to_ptr.vmem [resolvable:$true] %s34_s12 }
   0x7   :  { %p1111_p1 = scmp.lt.u32.totalorder %s1107_s15, %s1378_s1 }
   0x9   :  { %p1113_p2 = pnand %p1111_p1, %p1108_p0 }
   0xb   :  { %1116 = shalt.err (!%p1113_p2)
}
   0xc   :  { %s1117_s8 = scalar_lea.vmem %s35_s12, 512  ;;  %p1122_p4 = scmp.lt.s32.totalorder %s35_s12, %s35_s12 }
   0xd   :  { %p1118_p3 = scmp.ne.s32.totalorder %s35_s12, %s1117_s8  ;;  %p1123_p5 = scmp.lt.s32.totalorder %s1117_s8, %s1117_s8 }
   0xf   :  { %p1124_p6 = por %p1123_p5, %p1122_p4 }
  0x11   :  { %p1125_p7 = pnand %p1124_p6, %p1118_p3 }
  0x13   :  { %1128 = shalt.err (!%p1125_p7)
}
  0x14   :  { %s1224_s20 = smov 128   ;;  %s1225_s21 = smov 8  }
  0x15   :  { %40 = dma.hbm_to_vmem [thread:$0]  %s1378_s1, 512, %s35_s12, [#allocation6], %s1224_s20, %s1224_s20, %s1225_s21  }
  0x16   :  { %s1226_s24 = smov [#allocation8]   ;;  %s1227_s26 = smov [#allocation3]  }
  0x17   :  { %s62_s25 = sshll.u32 %s1226_s24, 4  ;;  %s25_s27 = sshll.u32 %s1227_s26, 4  ;;  %s63_s25 = int_to_ptr.vmem [resolvable:$true] %s62_s25  ;;  %s26_s27 = int_to_ptr.vmem [resolvable:$true] %s25_s27 }
  0x18   :  { %s1129_s30 = scalar_lea.hbm %s1382_s5, 4096 }
  0x19   :  { %p1130_p8 = scmp.ne.s32.totalorder %s1382_s5, %s1129_s30  ;;  %p1133_p9 = scmp.lt.u32.totalorder %s1129_s30, %s1382_s5 }
  0x1b   :  { %p1135_p10 = pnand %p1133_p9, %p1130_p8 }
  0x1d   :  { %1138 = shalt.err (!%p1135_p10)
}
  0x1e   :  { %s1139_s1 = scalar_lea.vmem %s63_s25, 4096  ;;  %p1144_p12 = scmp.lt.s32.totalorder %s63_s25, %s63_s25 }
  0x1f   :  { %p1140_p11 = scmp.ne.s32.totalorder %s63_s25, %s1139_s1  ;;  %p1145_p13 = scmp.lt.s32.totalorder %s1139_s1, %s1139_s1 }
  0x21   :  { %p1146_p0 = por %p1145_p13, %p1144_p12 }
  0x23   :  { %p1147_p1 = pnand %p1146_p0, %p1140_p11 }
  0x25   :  { %1150 = shalt.err (!%p1147_p1)
}
  0x26   :  { %68 = dma.hbm_to_vmem [thread:$0]  %s1382_s5, 4096, %s63_s25, [#allocation9], %s1224_s20, %s1224_s20, %s1225_s21  }
  0x27   :  { %s1151_s18 = scalar_lea.hbm %s1377_s0, 128 }
  0x28   :  { %p1152_p2 = scmp.ne.s32.totalorder %s1377_s0, %s1151_s18  ;;  %p1155_p3 = scmp.lt.u32.totalorder %s1151_s18, %s1377_s0 }
  0x2a   :  { %p1157_p4 = pnand %p1155_p3, %p1152_p2 }
  0x2c   :  { %1160 = shalt.err (!%p1157_p4)
}
  0x2d   :  { %s1161_s24 = scalar_lea.vmem %s26_s27, 128  ;;  %p1166_p6 = scmp.lt.s32.totalorder %s26_s27, %s26_s27 }
  0x2e   :  { %p1162_p5 = scmp.ne.s32.totalorder %s26_s27, %s1161_s24  ;;  %p1167_p7 = scmp.lt.s32.totalorder %s1161_s24, %s1161_s24 }
  0x30   :  { %p1168_p8 = por %p1167_p7, %p1166_p6 }
  0x32   :  { %p1169_p9 = pnand %p1168_p8, %p1162_p5 }
  0x34   :  { %1172 = shalt.err (!%p1169_p9)
}
  0x35   :  { %28 = dma.hbm_to_vmem [thread:$0]  %s1377_s0, 128, %s26_s27, [#allocation4]  }
  0x36   :  { %s1228_s26 = smov [#allocation7]   ;;  %s1229_s29 = smov [#allocation10]  }
  0x37   :  { %s48_s28 = sshll.u32 %s1228_s26, 4  ;;  %s76_s30 = sshll.u32 %s1229_s29, 4  ;;  %s49_s28 = int_to_ptr.vmem [resolvable:$true] %s48_s28  ;;  %s77_s30 = int_to_ptr.vmem [resolvable:$true] %s76_s30 }
  0x38   :  { %s1173_s13 = scalar_lea.hbm %s1380_s3, 4096 }
  0x39   :  { %p1174_p10 = scmp.ne.s32.totalorder %s1380_s3, %s1173_s13  ;;  %p1177_p11 = scmp.lt.u32.totalorder %s1173_s13, %s1380_s3 }
  0x3b   :  { %p1179_p12 = pnand %p1177_p11, %p1174_p10 }
  0x3d   :  { %1182 = shalt.err (!%p1179_p12)
}
  0x3e   :  { %s1183_s0 = scalar_lea.vmem %s49_s28, 4096  ;;  %p1188_p0 = scmp.lt.s32.totalorder %s49_s28, %s49_s28 }
  0x3f   :  { %p1184_p13 = scmp.ne.s32.totalorder %s49_s28, %s1183_s0  ;;  %p1189_p1 = scmp.lt.s32.totalorder %s1183_s0, %s1183_s0 }
  0x41   :  { %p1190_p2 = por %p1189_p1, %p1188_p0 }
  0x43   :  { %p1191_p3 = pnand %p1190_p2, %p1184_p13 }
  0x45   :  { %1194 = shalt.err (!%p1191_p3)
}
  0x46   :  { %54 = dma.hbm_to_vmem [thread:$0]  %s1380_s3, 4096, %s49_s28, [#allocation6], %s1224_s20, %s1224_s20, %s1225_s21  }
  0x47   :  { %s1195_s19 = scalar_lea.hbm %s1384_s7, 2048 }
  0x48   :  { %p1196_p4 = scmp.ne.s32.totalorder %s1384_s7, %s1195_s19  ;;  %p1199_p5 = scmp.lt.u32.totalorder %s1195_s19, %s1384_s7 }
  0x4a   :  { %p1201_p6 = pnand %p1199_p5, %p1196_p4 }
  0x4c   :  { %1204 = shalt.err (!%p1201_p6)
}
  0x4d   :  { %s1205_s5 = scalar_lea.vmem %s77_s30, 2048  ;;  %p1210_p8 = scmp.lt.s32.totalorder %s77_s30, %s77_s30 }
  0x4e   :  { %p1206_p7 = scmp.ne.s32.totalorder %s77_s30, %s1205_s5  ;;  %p1211_p9 = scmp.lt.s32.totalorder %s1205_s5, %s1205_s5 }
  0x50   :  { %p1212_p10 = por %p1211_p9, %p1210_p8 }
  0x52   :  { %p1213_p11 = pnand %p1212_p10, %p1206_p7 }
  0x54   :  { %1216 = shalt.err (!%p1213_p11)
}
  0x55   :  { %s1230_s3 = smov 64   ;;  %s1231_s20 = smov 4  }
  0x56   :  { %82 = dma.hbm_to_vmem [thread:$0]  %s1384_s7, 2048, %s77_s30, [#allocation9], %s1230_s3, %s1230_s3, %s1231_s20  }
  0x57   :  { %1217 = dma.done.wait [#allocation4], 128  }
  0x58   :  { %1218 = vsyncadd [#allocation4], 4294967168 }
  0x59   :  { %1219 = dma.done.wait [#allocation6], 4608  }
  0x5a   :  { %1220 = vsyncadd [#allocation6], 4294962688 }
  0x5b   :  { %1221 = dma.done.wait [#allocation9], 6144  }
  0x5c   :  { %1222 = vsyncadd [#allocation9], 4294961152  ;;  %v1232_v1 = vmov 0   ;;  %v989_v2 = vld [vmem:[#allocation5 + $0x4] ss:$8 sps:$4 sm:$0xff]   ;;  %v101_v6 = vld [vmem:[#allocation3] sm:$0xff] }
  0x5d   :  { %175 = vmatprep.mubr.bf16.mxu0 %v1232_v1  ;;  %v991_v3 = vld [vmem:[#allocation5] ss:$8 sps:$4 sm:$0xff]   ;;  %143 = vmatprep.subr.bf16.mxu0 %v989_v2  ;;  %v992_v4 = vld [vmem:[#allocation5 + $0x14] ss:$8 sps:$4 sm:$0xff]   ;;  %v994_v5 = vld [vmem:[#allocation5 + $0x10] ss:$8 sps:$4 sm:$0xff]   ;;  %v102_v10 = vpack.c.bf16 %v101_v6, %v101_v6 }
  0x5e   :  { %144 = vmatpush1.bf16.msra.mxu0 %v991_v3  ;;  %v995_v7 = vld [vmem:[#allocation7 + $0x4] ss:$8 sps:$4 sm:$0xff]   ;;  %v997_v8 = vld [vmem:[#allocation7] ss:$8 sps:$4 sm:$0xff]   ;;  %v998_v9 = vld [vmem:[#allocation7 + $0x14] ss:$8 sps:$4 sm:$0xff]  }
  0x5f   :  { %145 = vmatprep.subr.bf16.mxu0 %v992_v4  ;;  %392 = vmatprep.subr.bf16.mxu1 %v995_v7  ;;  %v1000_v11 = vld [vmem:[#allocation7 + $0x10] ss:$8 sps:$4 sm:$0xff]   ;;  %vm139_vm0 = vcmask 261120   ;;  %v1001_v12 = vld [vmem:[#allocation7 + $0x24] ss:$8 sps:$4 sm:$0xff]   ;;  %v109_v4 = vlaneseq  ;;  %vm862_vm1 = vcmask 7168  }
  0x60   :  { %393 = vmatpush1.bf16.msra.mxu1 %v997_v8  ;;  %v1003_v13 = vld [vmem:[#allocation7 + $0x20] ss:$8 sps:$4 sm:$0xff]   ;;  %v1004_v14 = vld [vmem:[#allocation7 + $0x34] ss:$8 sps:$4 sm:$0xff]   ;;  %v1006_v15 = vld [vmem:[#allocation7 + $0x30] ss:$8 sps:$4 sm:$0xff]  }
  0x61   :  { %394 = vmatprep.subr.bf16.mxu1 %v998_v9  ;;  %v1007_v16 = vld [vmem:[#allocation7 + $0x44] ss:$8 sps:$4 sm:$0xff]   ;;  %v1009_v17 = vld [vmem:[#allocation7 + $0x40] ss:$8 sps:$4 sm:$0xff]   ;;  %v1010_v18 = vld [vmem:[#allocation7 + $0x54] ss:$8 sps:$4 sm:$0xff]  }
  0x62   :  { %146 = vmatpush1.bf16.msra.mxu0 %v994_v5  ;;  %v1012_v19 = vld [vmem:[#allocation7 + $0x50] ss:$8 sps:$4 sm:$0xff]   ;;  %v1013_v20 = vld [vmem:[#allocation7 + $0x64] ss:$8 sps:$4 sm:$0xff]   ;;  %v1015_v21 = vld [vmem:[#allocation7 + $0x60] ss:$8 sps:$4 sm:$0xff]  }
  0x63   :  { %v1016_v22 = vld [vmem:[#allocation7 + $0x74] ss:$8 sps:$4 sm:$0xff]   ;;  %v1018_v23 = vld [vmem:[#allocation7 + $0x70] ss:$8 sps:$4 sm:$0xff]   ;;  %v1019_v24 = vld [vmem:[#allocation7 + $0x84] ss:$8 sps:$4 sm:$0xff]  }
  0x64   :  { %395 = vmatpush1.bf16.msra.mxu1 %v1000_v11  ;;  %v1021_v25 = vld [vmem:[#allocation7 + $0x80] ss:$8 sps:$4 sm:$0xff]   ;;  %v1022_v26 = vld [vmem:[#allocation7 + $0x94] ss:$8 sps:$4 sm:$0xff]   ;;  %v1024_v27 = vld [vmem:[#allocation7 + $0x90] ss:$8 sps:$4 sm:$0xff]  }
  0x65   :  { %875 = vmatmul.mubr.msk.bf16.vlgmr.msra.gmra.mrb[0].mxu0 %vm139_vm0, %v102_v10  ;;  %396 = vmatprep.subr.bf16.mxu1 %v1001_v12  ;;  %v1025_v28 = vld [vmem:[#allocation7 + $0xa4] ss:$8 sps:$4 sm:$0xff]   ;;  %v1027_v29 = vld [vmem:[#allocation7 + $0xa0] ss:$8 sps:$4 sm:$0xff]   ;;  %v1028_v30 = vld [vmem:[#allocation7 + $0xb4] ss:$8 sps:$4 sm:$0xff]  }
  0x66   :  { %v1030_v31 = vld [vmem:[#allocation7 + $0xb0] ss:$8 sps:$4 sm:$0xff]   ;;  %v1031_v32 = vld [vmem:[#allocation7 + $0xc4] ss:$8 sps:$4 sm:$0xff]   ;;  %v1033_v33 = vld [vmem:[#allocation7 + $0xc0] ss:$8 sps:$4 sm:$0xff]  }
  0x67   :  { %v1034_v34 = vld [vmem:[#allocation7 + $0xd4] ss:$8 sps:$4 sm:$0xff]   ;;  %v1036_v35 = vld [vmem:[#allocation7 + $0xd0] ss:$8 sps:$4 sm:$0xff]   ;;  %v1037_v36 = vld [vmem:[#allocation7 + $0xe4] ss:$8 sps:$4 sm:$0xff]  }
  0x68   :  { %397 = vmatpush1.bf16.msra.mxu1 %v1003_v13  ;;  %v1039_v37 = vld [vmem:[#allocation7 + $0xe0] ss:$8 sps:$4 sm:$0xff]   ;;  %v1040_v38 = vld [vmem:[#allocation7 + $0xf4] ss:$8 sps:$4 sm:$0xff]   ;;  %v1042_v39 = vld [vmem:[#allocation7 + $0xf0] ss:$8 sps:$4 sm:$0xff]  }
  0x69   :  { %398 = vmatprep.subr.bf16.mxu1 %v1004_v14  ;;  %v1043_v40 = vld [vmem:[#allocation8] ss:$8 sps:$4 sm:$0xff]   ;;  %v1045_v41 = vld [vmem:[#allocation8 + $0x4] ss:$8 sps:$4 sm:$0xff]   ;;  %v1048_v42 = vld [vmem:[#allocation8 + $0x14] ss:$8 sps:$4 sm:$0xff]  }
  0x6a   :  { %641 = vmatprep.subr.bf16.mxu0 %v1045_v41  ;;  %v1046_v43 = vld [vmem:[#allocation8 + $0x10] ss:$8 sps:$4 sm:$0xff]   ;;  %v1051_v44 = vld [vmem:[#allocation8 + $0x24] ss:$8 sps:$4 sm:$0xff]   ;;  %v1049_v45 = vld [vmem:[#allocation8 + $0x20] ss:$8 sps:$4 sm:$0xff]  }
  0x6b   :  { %642 = vmatpush1.bf16.msra.mxu0 %v1043_v40  ;;  %v1054_v46 = vld [vmem:[#allocation8 + $0x34] ss:$8 sps:$4 sm:$0xff]   ;;  %v1052_v47 = vld [vmem:[#allocation8 + $0x30] ss:$8 sps:$4 sm:$0xff]   ;;  %v1057_v48 = vld [vmem:[#allocation8 + $0x44] ss:$8 sps:$4 sm:$0xff]  }
  0x6c   :  { %399 = vmatpush1.bf16.msra.mxu1 %v1006_v15  ;;  %643 = vmatprep.subr.bf16.mxu0 %v1048_v42  ;;  %v1055_v49 = vld [vmem:[#allocation8 + $0x40] ss:$8 sps:$4 sm:$0xff]   ;;  %v1060_v50 = vld [vmem:[#allocation8 + $0x54] ss:$8 sps:$4 sm:$0xff]   ;;  %v1058_v51 = vld [vmem:[#allocation8 + $0x50] ss:$8 sps:$4 sm:$0xff]  }
  0x6d   :  { %400 = vmatprep.subr.bf16.mxu1 %v1007_v16  ;;  %v1063_v52 = vld [vmem:[#allocation8 + $0x64] ss:$8 sps:$4 sm:$0xff]   ;;  %v1061_v53 = vld [vmem:[#allocation8 + $0x60] ss:$8 sps:$4 sm:$0xff]   ;;  %v1066_v54 = vld [vmem:[#allocation8 + $0x74] ss:$8 sps:$4 sm:$0xff]  }
  0x6e   :  { %v1064_v55 = vld [vmem:[#allocation8 + $0x70] ss:$8 sps:$4 sm:$0xff]   ;;  %v1069_v56 = vld [vmem:[#allocation8 + $0x84] ss:$8 sps:$4 sm:$0xff]   ;;  %v1067_v57 = vld [vmem:[#allocation8 + $0x80] ss:$8 sps:$4 sm:$0xff]  }
  0x6f   :  { %644 = vmatpush1.bf16.msra.mxu0 %v1046_v43  ;;  %v1072_v58 = vld [vmem:[#allocation8 + $0x94] ss:$8 sps:$4 sm:$0xff]   ;;  %v1070_v59 = vld [vmem:[#allocation8 + $0x90] ss:$8 sps:$4 sm:$0xff]   ;;  %v1075_v60 = vld [vmem:[#allocation8 + $0xa4] ss:$8 sps:$4 sm:$0xff]  }
  0x70   :  { %401 = vmatpush1.bf16.msra.mxu1 %v1009_v17  ;;  %645 = vmatprep.subr.bf16.mxu0 %v1051_v44  ;;  %v1073_v61 = vld [vmem:[#allocation8 + $0xa0] ss:$8 sps:$4 sm:$0xff]   ;;  %v1078_v62 = vld [vmem:[#allocation8 + $0xb4] ss:$8 sps:$4 sm:$0xff]   ;;  %v1076_v63 = vld [vmem:[#allocation8 + $0xb0] ss:$8 sps:$4 sm:$0xff]  }
  0x71   :  { %402 = vmatprep.subr.bf16.mxu1 %v1010_v18  ;;  %v1081_v0 = vld [vmem:[#allocation8 + $0xc4] ss:$8 sps:$4 sm:$0xff]   ;;  %v1079_v1 = vld [vmem:[#allocation8 + $0xc0] ss:$8 sps:$4 sm:$0xff]   ;;  %v1084_v2 = vld [vmem:[#allocation8 + $0xd4] ss:$8 sps:$4 sm:$0xff]  }
  0x72   :  { %v1082_v3 = vld [vmem:[#allocation8 + $0xd0] ss:$8 sps:$4 sm:$0xff]   ;;  %v110_v5 = vshrl.u32 %v109_v4, 7 }
  0x73   :  { %646 = vmatpush1.bf16.msra.mxu0 %v1049_v45  ;;  %v107_v7 = vld [vmem:[%s1379_s2] sm:$0x3] }
  0x74   :  { %403 = vmatpush1.bf16.msra.mxu1 %v1012_v19  ;;  %647 = vmatprep.subr.bf16.mxu0 %v1054_v46  ;;  %v1355_v6 = vsub.s32 0, %v110_v5  ;;  %v1360_v8 = vsub.s32 1, %v110_v5  ;;  %v956_v5 = vld [vmem:[#allocation2] ss:$0 sm:$0xff] }
  0x75   :  { %404 = vmatprep.subr.bf16.mxu1 %v1013_v20 }
  0x76   :  { %v112_v9 = vrot.slane %v107_v7, %v1355_v6  ;;  %v116_v10 = vrot.slane %v107_v7, %v1360_v8 }
  0x77   :  { %648 = vmatpush1.bf16.msra.mxu0 %v1052_v47 }
  0x78   :  { %405 = vmatpush1.bf16.msra.mxu1 %v1015_v21  ;;  %649 = vmatprep.subr.bf16.mxu0 %v1057_v48  ;;  %v1087_v21 = vld [vmem:[#allocation8 + $0xe4] ss:$8 sps:$4 sm:$0xff]  }
  0x79   :  { %406 = vmatprep.subr.bf16.mxu1 %v1016_v22  ;;  %v1085_v22 = vld [vmem:[#allocation8 + $0xe0] ss:$8 sps:$4 sm:$0xff]  }
  0x7b   :  { %650 = vmatpush1.bf16.msra.mxu0 %v1055_v49 }
  0x7c   :  { %407 = vmatpush1.bf16.msra.mxu1 %v1018_v23  ;;  %651 = vmatprep.subr.bf16.mxu0 %v1060_v50  ;;  %v1090_v23 = vld [vmem:[#allocation8 + $0xf4] ss:$8 sps:$4 sm:$0xff]  }
  0x7d   :  { %408 = vmatprep.subr.bf16.mxu1 %v1019_v24  ;;  %v1088_v24 = vld [vmem:[#allocation8 + $0xf0] ss:$8 sps:$4 sm:$0xff]  }
  0x7e   :  { %v1103_v50 = vld [vmem:[#allocation10 + $0x70] sm:$0xff]  }
  0x7f   :  { %652 = vmatpush1.bf16.msra.mxu0 %v1058_v51  ;;  %v1104_v51 = vld [vmem:[#allocation10 + $0x30] sm:$0xff]  }
  0x80   :  { %409 = vmatpush1.bf16.msra.mxu1 %v1021_v25  ;;  %653 = vmatprep.subr.bf16.mxu0 %v1063_v52  ;;  %v1091_v25 = vld [vmem:[#allocation10 + $0x40] sm:$0xff]   ;;  %v1105_v52 = vld [vmem:[#allocation10 + $0x78] sm:$0xff]  }
  0x81   :  { %410 = vmatprep.subr.bf16.mxu1 %v1022_v26  ;;  %v1092_v26 = vld [vmem:[#allocation10] sm:$0xff]  }
  0x83   :  { %654 = vmatpush1.bf16.msra.mxu0 %v1061_v53  ;;  %v1106_v53 = vld [vmem:[#allocation10 + $0x38] sm:$0xff]  }
  0x84   :  { %411 = vmatpush1.bf16.msra.mxu1 %v1024_v27  ;;  %655 = vmatprep.subr.bf16.mxu0 %v1066_v54  ;;  %v1093_v27 = vld [vmem:[#allocation10 + $0x48] sm:$0xff]   ;;  %v469_v54 = vld [vmem:[%s1383_s6] sm:$0x3] }
  0x85   :  { %412 = vmatprep.subr.bf16.mxu1 %v1025_v28  ;;  %v1094_v28 = vld [vmem:[#allocation10 + $0x8] sm:$0xff]  }
  0x87   :  { %656 = vmatpush1.bf16.msra.mxu0 %v1064_v55  ;;  %v474_v55 = vrot.slane %v469_v54, %v1355_v6 }
  0x88   :  { %413 = vmatpush1.bf16.msra.mxu1 %v1027_v29  ;;  %657 = vmatprep.subr.bf16.mxu0 %v1069_v56  ;;  %v1095_v29 = vld [vmem:[#allocation10 + $0x50] sm:$0xff]   ;;  %v478_v56 = vrot.slane %v469_v54, %v1360_v8 }
  0x89   :  { %414 = vmatprep.subr.bf16.mxu1 %v1028_v30  ;;  %v1096_v30 = vld [vmem:[#allocation10 + $0x10] sm:$0xff]  }
  0x8b   :  { %658 = vmatpush1.bf16.msra.mxu0 %v1067_v57 }
  0x8c   :  { %415 = vmatpush1.bf16.msra.mxu1 %v1030_v31  ;;  %659 = vmatprep.subr.bf16.mxu0 %v1072_v58  ;;  %v1097_v31 = vld [vmem:[#allocation10 + $0x58] sm:$0xff]  }
  0x8d   :  { %416 = vmatprep.subr.bf16.mxu1 %v1031_v32  ;;  %v1098_v32 = vld [vmem:[#allocation10 + $0x18] sm:$0xff]  }
  0x8f   :  { %660 = vmatpush1.bf16.msra.mxu0 %v1070_v59 }
  0x90   :  { %417 = vmatpush1.bf16.msra.mxu1 %v1033_v33  ;;  %661 = vmatprep.subr.bf16.mxu0 %v1075_v60  ;;  %v1099_v33 = vld [vmem:[#allocation10 + $0x60] sm:$0xff]  }
  0x91   :  { %418 = vmatprep.subr.bf16.mxu1 %v1034_v34  ;;  %v1100_v34 = vld [vmem:[#allocation10 + $0x20] sm:$0xff]  }
  0x93   :  { %662 = vmatpush1.bf16.msra.mxu0 %v1073_v61 }
  0x94   :  { %419 = vmatpush1.bf16.msra.mxu1 %v1036_v35  ;;  %663 = vmatprep.subr.bf16.mxu0 %v1078_v62  ;;  %v1101_v35 = vld [vmem:[#allocation10 + $0x68] sm:$0xff]  }
  0x95   :  { %420 = vmatprep.subr.bf16.mxu1 %v1037_v36  ;;  %v1102_v36 = vld [vmem:[#allocation10 + $0x28] sm:$0xff]  }
  0x97   :  { %664 = vmatpush1.bf16.msra.mxu0 %v1076_v63 }
  0x98   :  { %421 = vmatpush1.bf16.msra.mxu1 %v1039_v37  ;;  %665 = vmatprep.subr.bf16.mxu0 %v1081_v0  ;;  %v220_v37 = vld [vmem:[%s1381_s4] sm:$0x3] }
  0x99   :  { %422 = vmatprep.subr.bf16.mxu1 %v1040_v38  ;;  %v225_v38 = vrot.slane %v220_v37, %v1355_v6 }
  0x9b   :  { %666 = vmatpush1.bf16.msra.mxu0 %v1079_v1 }
  0x9c   :  { %423 = vmatpush1.bf16.msra.mxu1 %v1042_v39  ;;  %667 = vmatprep.subr.bf16.mxu0 %v1084_v2  ;;  %v229_v39 = vrot.slane %v220_v37, %v1360_v8 }
  0x9d   :  { %957 = vmatprep.subr.bf16.mxu1 %v1091_v25 }
  0x9f   :  { %668 = vmatpush1.bf16.msra.mxu0 %v1082_v3 }
  0xa0   :  { %669 = vmatprep.subr.bf16.mxu0 %v1087_v21 }
  0xa3   :  { %670 = vmatpush1.bf16.msra.mxu0 %v1085_v22 }
  0xa4   :  { %671 = vmatprep.subr.bf16.mxu0 %v1090_v23 }
  0xa7   :  { %672 = vmatpush1.bf16.msra.mxu0 %v1088_v24 }
 0x138   :  { %v177_v11 = vpop.f32.mrb[0].mxu0 }
 0x139   :  { %v178_v12 = vadd.f32 %v177_v11, %v112_v9  ;;  %v179_v13 = vpop.f32.mrb[1].mxu0 }
 0x13a   :  { %v180_v14 = vadd.f32 %v179_v13, %v116_v10  ;;  %v181_v15 = vpop.f32.mrb[2].mxu0 }
 0x13b   :  { %v184_v16 = vmax.f32 %v178_v12, 0.0  ;;  %v182_v17 = vpop.f32.mrb[3].mxu0 }
 0x13c   :  { %v185_v18 = vmax.f32 %v180_v14, 0.0 }
 0x13d   :  { %v186_v20 = vpack.c.bf16 %v184_v16, %v184_v16 }
 0x13e   :  { %v187_v19 = vpack.c.bf16 %v185_v18, %v185_v18 }
 0x140   :  { %424 = vmatprep.mubr.bf16.mxu1 %v187_v19 }
 0x141   :  { %425 = vmatmul.mubr.bf16.vlgmr.msra.gmra.mrb[0].mxu1 %v186_v20 }
 0x142   :  { %958 = vmatpush3.bf16.msra.mxu1 %v1092_v26 }
 0x143   :  { %959 = vmatprep.subr.bf16.mxu1 %v1093_v27 }
 0x146   :  { %960 = vmatpush3.bf16.msra.mxu1 %v1094_v28 }
 0x147   :  { %961 = vmatprep.subr.bf16.mxu1 %v1095_v29 }
 0x14a   :  { %962 = vmatpush3.bf16.msra.mxu1 %v1096_v30 }
 0x14b   :  { %963 = vmatprep.subr.bf16.mxu1 %v1097_v31 }
 0x14e   :  { %964 = vmatpush3.bf16.msra.mxu1 %v1098_v32 }
 0x14f   :  { %965 = vmatprep.subr.bf16.mxu1 %v1099_v33 }
 0x152   :  { %966 = vmatpush3.bf16.msra.mxu1 %v1100_v34 }
 0x153   :  { %967 = vmatprep.subr.bf16.mxu1 %v1101_v35 }
 0x156   :  { %968 = vmatpush3.bf16.msra.mxu1 %v1102_v36 }
 0x157   :  { %969 = vmatprep.subr.bf16.mxu1 %v1103_v50 }
 0x15a   :  { %970 = vmatpush3.bf16.msra.mxu1 %v1104_v51 }
 0x15b   :  { %971 = vmatprep.subr.bf16.mxu1 %v1105_v52 }
 0x15e   :  { %972 = vmatpush3.bf16.msra.mxu1 %v1106_v53 }
 0x214   :  { %v426_v40 = vpop.f32.mrb[0].mxu1 }
 0x215   :  { %v427_v41 = vadd.f32 %v426_v40, %v225_v38  ;;  %v428_v42 = vpop.f32.mrb[1].mxu1 }
 0x216   :  { %v429_v43 = vadd.f32 %v428_v42, %v229_v39  ;;  %v430_v44 = vpop.f32.mrb[2].mxu1 }
 0x217   :  { %v433_v45 = vmax.f32 %v427_v41, 0.0  ;;  %v431_v46 = vpop.f32.mrb[3].mxu1 }
 0x218   :  { %v434_v47 = vmax.f32 %v429_v43, 0.0 }
 0x219   :  { %v435_v49 = vpack.c.bf16 %v433_v45, %v433_v45 }
 0x21a   :  { %v436_v48 = vpack.c.bf16 %v434_v47, %v434_v47 }
 0x21c   :  { %673 = vmatprep.mubr.bf16.mxu0 %v436_v48 }
 0x21d   :  { %674 = vmatmul.mubr.bf16.vlgmr.msra.gmra.mrb[4].mxu0 %v435_v49 }
 0x2f0   :  { %v675_v57 = vpop.f32.mrb[4].mxu0 }
 0x2f1   :  { %v676_v58 = vadd.f32 %v675_v57, %v474_v55  ;;  %v677_v59 = vpop.f32.mrb[5].mxu0 }
 0x2f2   :  { %v678_v60 = vadd.f32 %v677_v59, %v478_v56  ;;  %v679_v61 = vpop.f32.mrb[6].mxu0 }
 0x2f3   :  { %v682_v62 = vmax.f32 %v676_v58, 0.0  ;;  %v680_v63 = vpop.f32.mrb[7].mxu0 }
 0x2f4   :  { %v683_v0 = vmax.f32 %v678_v60, 0.0 }
 0x2f5   :  { %v684_v2 = vpack.c.bf16 %v682_v62, %v682_v62 }
 0x2f6   :  { %v685_v1 = vpack.c.bf16 %v683_v0, %v683_v0 }
 0x2f8   :  { %846 = vmatprep.mubr.bf16.mxu1 %v685_v1 }
 0x2f9   :  { %847 = vmatmul.mubr.bf16.vlgmr.msra.gmra.mrb[4].mxu1 %v684_v2 }
 0x3cc   :  { %v973_v3 = vpop.f32.mrb[4].mxu1 }
 0x3cd   :  { %v974_v4 = vpop.f32.mrb[5].mxu1 }
 0x3ce   :  { %v975_v7 = vadd.f32 %v974_v4, %v973_v3  ;;  %v976_v9 = vpop.f32.mrb[6].mxu1 }
 0x3cf   :  { %v977_v6 = vpop.f32.mrb[7].mxu1 }
 0x3d0   :  { %v861_v8 = vadd.f32 %v975_v7, %v956_v5 }
 0x3d2   :  { %863 = vst.msk [vmem:[%s1386_s9] sm:$0xff] %vm862_vm1, %v861_v8 }
 0x3d3   :  { %868 = vsyncpa [#allocation4], 1 }
 0x3d4   :  { %869 = vsyncpa [#allocation6], 1 }
 0x3d5   :  { %870 = vsyncpa [#allocation9], 1 }

</bundles_post_ra>
